<compile_context>
chip_gen: v6e
topology: v6e:2x2x1
jax: 0.10.0
libtpu: 0.0.40
codegen_flags: <defaults>
</compile_context>

<pallas_src>
import functools

import jax
import jax.numpy as jnp
from jax.experimental import pallas as pl
from jax.experimental.pallas import tpu as pltpu


# ---------------------------------------------------------------------------
# Kernel 1: pairwise Euclidean distance matrix
# ---------------------------------------------------------------------------
def _dist_kernel(x_ref, sqc_ref, sqr_ref, dist_ref, *, use_bf16_gram):
    x = x_ref[...]                                         # (N, D) f32
    # Optional bf16 gram (v5e/v6e MXU is bf16-native). Off by default so the
    # result matches the f32 reference to tight tolerance.
    xm = x.astype(jnp.bfloat16) if use_bf16_gram else x
    gram = jax.lax.dot_general(                            # (N, N) on the MXU
        xm, xm,
        dimension_numbers=(((1,), (1,)), ((), ())),
        preferred_element_type=jnp.float32)
    d2 = sqc_ref[...] + sqr_ref[...] - 2.0 * gram          # (N,1)+(1,N) bcast
    dist_ref[...] = jnp.sqrt(jnp.maximum(d2, 1e-16))


# ---------------------------------------------------------------------------
# Kernel 2: batch-all triplet hinge over anchor blocks
# ---------------------------------------------------------------------------
def _triplet_kernel(t_sm, dist_ref, tcol_ref, trow_ref,
                    psum_ref, pcnt_ref, acc_sum, acc_cnt,
                    *, margin, anchors_per_block):
    N = dist_ref.shape[0]
    TA = anchors_per_block
    b = pl.program_id(0)
    i0 = pl.multiple_of(b * TA, TA)                        # first anchor of block

    # fresh per-block accumulators (per-block partials -> grid axis can be parallel)
    acc_sum[...] = jnp.zeros_like(acc_sum)
    acc_cnt[...] = jnp.zeros_like(acc_cnt)

    # ---- hoisted per-block constants (iotas, label vectors, anchor rows) ----
    t_col = tcol_ref[...]                                  # (N, 1) i32
    t_row = trow_ref[...]                                  # (1, N) i32
    row_iota = jax.lax.broadcasted_iota(jnp.int32, (N, 1), 0)
    rows = dist_ref[pl.ds(i0, TA), :]                      # (TA, N) anchor rows

    # Column-oriented anchor distances for the whole block with a single MXU
    # matmul:  ap_blk[j, a] = dist[j, i0+a] (= dist[i0+a, j], dist symmetric).
    # Avoids per-anchor dynamic lane slicing / transposes; exact (one-hot rhs).
    m_iota = jax.lax.broadcasted_iota(jnp.int32, (N, TA), 0)
    a_iota = jax.lax.broadcasted_iota(jnp.int32, (N, TA), 1)
    onehot = (m_iota == a_iota + i0).astype(jnp.float32)   # (N, TA)
    ap_blk = jnp.dot(dist_ref[...], onehot,
                     preferred_element_type=jnp.float32)   # (N, TA)

    # small static unroll over the anchors of this block (block size bounds it)
    for a in range(TA):
        i = i0 + a
        t_i = t_sm[i]                                      # SMEM scalar label
        ap = ap_blk[:, a:a + 1]                            # (N,1)  dist[i, j]
        an = rows[a:a + 1, :]                              # (1,N)  dist[i, k]

        # simplified mask: (t[j]==t[i]) & (j!=i) & (t[k]!=t[i])
        pos = jnp.logical_and(t_col == t_i, row_iota != i)   # (N,1)
        neg = t_row != t_i                                    # (1,N)
        mask = jnp.logical_and(pos, neg)                      # (N,N)

        tl = ap - an + jnp.float32(margin)                    # (N,N)
        loss = jnp.where(mask, jnp.maximum(tl, 0.0), 0.0)

        acc_sum[...] += loss
        acc_cnt[...] += (loss > 1e-16).astype(jnp.float32)

    # fold (N,N) accumulators into lane-dense (8,N) partials: pure VPU adds of
    # (8,N) slabs; the final cross-lane reduction happens in the wrapper.
    def fold(ref):
        part = ref[0:8, :]
        for g in range(1, N // 8):
            part = part + ref[g * 8:(g + 1) * 8, :]
        return part

    psum_ref[...] = fold(acc_sum).reshape(1, 8, N)
    pcnt_ref[...] = fold(acc_cnt).reshape(1, 8, N)


# ---------------------------------------------------------------------------
# Wrapper
# ---------------------------------------------------------------------------
def my_triplet_loss(inputs, targets, margin=0.8, anchors_per_block=8,
                    use_bf16_gram=False):
    """inputs: (N, D) float embeddings; targets: (N,) integer labels."""
    inputs = inputs.astype(jnp.float32)
    N, D = inputs.shape
    TA = anchors_per_block
    assert N % 8 == 0 and N % TA == 0, "N must be a multiple of 8 and of TA"
    NB = N // TA

    labels = targets.astype(jnp.int32).reshape(N)
    t_col = labels.reshape(N, 1)
    t_row = labels.reshape(1, N)
    sq = jnp.sum(inputs * inputs, axis=1)                  # cheap O(N*D) in XLA
    sq_col = sq.reshape(N, 1)
    sq_row = sq.reshape(1, N)

    # ---- kernel 1: distance matrix -------------------------------------
    dist = pl.pallas_call(
        functools.partial(_dist_kernel, use_bf16_gram=use_bf16_gram),
        out_shape=jax.ShapeDtypeStruct((N, N), jnp.float32),
        in_specs=[
            pl.BlockSpec((N, D), lambda: (0, 0)),
            pl.BlockSpec((N, 1), lambda: (0, 0)),
            pl.BlockSpec((1, N), lambda: (0, 0)),
        ],
        out_specs=pl.BlockSpec((N, N), lambda: (0, 0)),
        cost_estimate=pl.CostEstimate(
            flops=2 * N * N * D, transcendentals=N * N,
            bytes_accessed=4 * (N * D + 2 * N + N * N)),
    )(inputs, sq_col, sq_row)

    # ---- kernel 2: triplet hinge, gridded over anchor blocks -----------
    psum, pcnt = pl.pallas_call(
        functools.partial(_triplet_kernel, margin=float(margin),
                          anchors_per_block=TA),
        out_shape=(jax.ShapeDtypeStruct((NB, 8, N), jnp.float32),
                   jax.ShapeDtypeStruct((NB, 8, N), jnp.float32)),
        grid_spec=pltpu.PrefetchScalarGridSpec(
            num_scalar_prefetch=1,                         # labels -> SMEM
            grid=(NB,),
            in_specs=[
                pl.BlockSpec((N, N), lambda b, t: (0, 0)),   # dist (resident)
                pl.BlockSpec((N, 1), lambda b, t: (0, 0)),   # labels as column
                pl.BlockSpec((1, N), lambda b, t: (0, 0)),   # labels as row
            ],
            out_specs=[
                pl.BlockSpec((1, 8, N), lambda b, t: (b, 0, 0)),
                pl.BlockSpec((1, 8, N), lambda b, t: (b, 0, 0)),
            ],
            scratch_shapes=[pltpu.VMEM((N, N), jnp.float32),
                            pltpu.VMEM((N, N), jnp.float32)],
        ),
        compiler_params=pltpu.CompilerParams(
            dimension_semantics=("parallel",)),
        cost_estimate=pl.CostEstimate(
            flops=8 * N * N * N, transcendentals=0,
            bytes_accessed=4 * (N * N + 2 * N + 2 * NB * 8 * N)),
    )(labels, dist, t_col, t_row)

    total = jnp.sum(psum)
    count = jnp.sum(pcnt)
    return total / (count + 1e-16)


# ---------------------------------------------------------------------------
# Pure-JAX reference (matches the PyTorch forward exactly)
# ---------------------------------------------------------------------------
def _reference_triplet_loss(x, t, margin=0.8):
    N = x.shape[0]
    sq = jnp.sum(x * x, axis=1, keepdims=True)
    d2 = sq + sq.T - 2.0 * (x @ x.T)
    dist = jnp.sqrt(jnp.clip(d2, 1e-16))
    ap = dist[:, :, None]
    an = dist[:, None, :]
    tl = ap - an + margin
    idx = ~jnp.eye(N, dtype=bool)
    dist_indices = idx[:, :, None] & idx[:, None, :] & idx[None, :, :]
    teq = t[None, :] == t[:, None]
    valid = teq[:, :, None] & (~teq[:, None, :])
    mask = (valid & dist_indices).astype(jnp.float32)
    loss = jnp.maximum(mask * tl, 0.0)
    num = jnp.sum((loss > 1e-16).astype(jnp.float32))
    return jnp.sum(loss) / (num + 1e-16)


if __name__ == "__main__":
    key = jax.random.PRNGKey(0)
    k_x, k_t = jax.random.split(key)

    N, D = 128, 64
    inputs = jax.random.normal(k_x, (N, D), dtype=jnp.float32)
    targets = jax.random.randint(k_t, (N,), 0, 4, dtype=jnp.int32)

    loss = my_triplet_loss(inputs, targets, margin=0.8)
    loss = jax.block_until_ready(loss)

    ref = _reference_triplet_loss(inputs, targets, margin=0.8)
    # 1e-4: f32 accumulation-order differences over ~1e5 triplets vs the
    # single monolithic XLA reduction in the reference.
    assert jnp.allclose(loss, ref, rtol=1e-4, atol=1e-4), (loss, ref)

    print("KERNEL_OK")
</pallas_src>

<mosaic_0001>
module attributes {stable_mosaic.version = 11 : i64} {
  func.func @_dist_kernel(%arg0: memref<128x64xf32, #tpu.memory_space<vmem>>, %arg1: memref<128x1xf32, #tpu.memory_space<vmem>>, %arg2: memref<1x128xf32, #tpu.memory_space<vmem>>, %arg3: memref<128x128xf32, #tpu.memory_space<vmem>>) attributes {dimension_semantics = [], scalar_prefetch = 0 : i64, scratch_operands = 0 : i64, tpu.core_type = #tpu.core_type<tc>} {
    %c0 = arith.constant 0 : index
    %c0_0 = arith.constant 0 : index
    %0 = vector.load %arg0[%c0, %c0_0] : memref<128x64xf32, #tpu.memory_space<vmem>>, vector<128x64xf32>
    %cst = arith.constant dense<0.000000e+00> : vector<128x128xf32>
    %1 = tpu.matmul %0, %0, %cst {dimension_numbers = #tpu.dot_dimension_numbers<[1], [1], [0], [0], [0, 0, 1, 0], [], []>} : vector<128x64xf32>, vector<128x64xf32>, vector<128x128xf32> -> vector<128x128xf32>
    %c0_1 = arith.constant 0 : index
    %c0_2 = arith.constant 0 : index
    %2 = vector.load %arg1[%c0_1, %c0_2] : memref<128x1xf32, #tpu.memory_space<vmem>>, vector<128x1xf32>
    %c0_3 = arith.constant 0 : index
    %c0_4 = arith.constant 0 : index
    %3 = vector.load %arg2[%c0_3, %c0_4] : memref<1x128xf32, #tpu.memory_space<vmem>>, vector<1x128xf32>
    %4 = vector.broadcast %2 : vector<128x1xf32> to vector<128x128xf32>
    %5 = vector.broadcast %3 : vector<1x128xf32> to vector<128x128xf32>
    %6 = arith.addf %4, %5 : vector<128x128xf32>
    %cst_5 = arith.constant 2.000000e+00 : f32
    %7 = vector.broadcast %cst_5 : f32 to vector<128x128xf32>
    %8 = arith.mulf %7, %1 : vector<128x128xf32>
    %9 = arith.subf %6, %8 : vector<128x128xf32>
    %cst_6 = arith.constant 1.000000e-16 : f32
    %10 = vector.broadcast %cst_6 : f32 to vector<128x128xf32>
    %11 = arith.maximumf %9, %10 : vector<128x128xf32>
    %12 = math.sqrt %11 : vector<128x128xf32>
    %c0_7 = arith.constant 0 : index
    %c0_8 = arith.constant 0 : index
    %13 = vector.load %arg3[%c0_7, %c0_8] : memref<128x128xf32, #tpu.memory_space<vmem>>, vector<128x128xf32>
    tpu.vector_store %arg3[%c0_7, %c0_8], %12 {strides = array<i32>} : memref<128x128xf32, #tpu.memory_space<vmem>>, vector<128x128xf32>,
    return
  }
}

</mosaic_0001>

<bundles_post_ra>
// kernel: tpu_custom_call.1
= control target key start
LH: loop header
LB: loop body
LE: loop exit
PB: predicated region body
PF: predicated region fallthrough
CT: control target
= control target key end

     0   :  { %vm31_vm0 = vcmask 523264   ;;  %v749_v4 = vmov 0   ;;  %s1217_s0 = inlined_call_operand.vmem [shape: f32[128,64], index: 0, kind: input, shape index: {}]   ;;  %s1218_s1 = inlined_call_operand.vmem [shape: f32[128,1], index: 1, kind: input, shape index: {}]   ;;  %s1219_s2 = inlined_call_operand.vmem [shape: f32[1,128], index: 2, kind: input, shape index: {}]   ;;  %s1220_s3 = inlined_call_operand.hbm [shape: f32[128,128], index: 3, kind: output, shape index: {}]  }
   0x1   :  { %v776_v0 = vld [vmem:[%s1217_s0 + $0x78] sm:$0xff]  ;;  %v781_v1 = vld [vmem:[%s1217_s0 + $0x70] sm:$0xff]  ;;  %v798_v2 = vld [vmem:[%s1217_s0 + $0x40] sm:$0xff]  ;;  %694 = vset.pattern.permute.xlu1 %v749_v4  ;;  %693 = vset.pattern.permute.xlu0 %v749_v4 }
   0x2   :  { %601 = vmatprep.subr.msk.mxu0 %vm31_vm0, %v776_v0  ;;  %657 = vmatprep.subr.msk.mxu1 %vm31_vm0, %v776_v0  ;;  %v803_v3 = vld [vmem:[%s1217_s0 + $0x68] sm:$0xff]  ;;  %v227_v5 = vld [vmem:[%s1218_s1 + $0x10] sm:$0xff]  ;;  %v225_v6 = vld [vmem:[%s1218_s1] sm:$0xff] }
   0x3   :  { %602 = vmatpush3.xpose.msk.msra.mxu0 %vm31_vm0, %v776_v0  ;;  %673 = vmatpush3.xpose.msk.msra.mxu1 %vm31_vm0, %v776_v0  ;;  %v824_v7 = vld [vmem:[%s1217_s0] sm:$0xff]  ;;  %v228_v9 = vld [vmem:[%s1218_s1 + $0x18] sm:$0xff]  ;;  %v226_v10 = vld [vmem:[%s1218_s1 + $0x8] sm:$0xff] }
   0x4   :  { %603 = vmatprep.subr.msk.mxu0 %vm31_vm0, %v781_v1  ;;  %658 = vmatprep.subr.msk.mxu1 %vm31_vm0, %v781_v1  ;;  %v829_v8 = vld [vmem:[%s1217_s0 + $0x60] sm:$0xff] }
   0x5   :  { %645 = vmatprep.mubr.msk.f32.mxu1 %vm31_vm0, %v798_v2  ;;  %633 = vmatprep.mubr.msk.f32.mxu0 %vm31_vm0, %v824_v7 }
   0x6   :  { %254 = vperm.xlu1 %694, %v227_v5   ;;  %244 = vperm.xlu0 %693, %v225_v6  }
   0x7   :  { %604 = vmatpush3.xpose.msk.msra.mxu0 %vm31_vm0, %v781_v1  ;;  %674 = vmatpush3.xpose.msk.msra.mxu1 %vm31_vm0, %v781_v1 }
   0x8   :  { %605 = vmatprep.subr.msk.mxu0 %vm31_vm0, %v803_v3  ;;  %659 = vmatprep.subr.msk.mxu1 %vm31_vm0, %v803_v3 }
   0xb   :  { %606 = vmatpush3.xpose.msk.msra.mxu0 %vm31_vm0, %v803_v3  ;;  %675 = vmatpush3.xpose.msk.msra.mxu1 %vm31_vm0, %v803_v3 }
   0xc   :  { %607 = vmatprep.subr.msk.mxu0 %vm31_vm0, %v829_v8  ;;  %660 = vmatprep.subr.msk.mxu1 %vm31_vm0, %v829_v8 }
   0xd   :  { %8 = vsyncpa [#allocation3], 0  ;;  %v850_v11 = vld [vmem:[%s1217_s0 + $0x58] sm:$0xff]  ;;  %259 = vperm.xlu1 %694, %v228_v9   ;;  %249 = vperm.xlu0 %693, %v226_v10   ;;  %v230_v12 = vld [vmem:[%s1218_s1 + $0x28] sm:$0xff] }
   0xe   :  { %v229_v13 = vld [vmem:[%s1218_s1 + $0x20] sm:$0xff]  ;;  %v869_v14 = vld [vmem:[%s1217_s0 + $0x50] sm:$0xff]  ;;  %v232_v15 = vld [vmem:[%s1218_s1 + $0x38] sm:$0xff] }
   0xf   :  { %608 = vmatpush3.xpose.msk.msra.mxu0 %vm31_vm0, %v829_v8  ;;  %676 = vmatpush3.xpose.msk.msra.mxu1 %vm31_vm0, %v829_v8  ;;  %v231_v16 = vld [vmem:[%s1218_s1 + $0x30] sm:$0xff]  ;;  %v888_v17 = vld [vmem:[%s1217_s0 + $0x48] sm:$0xff]  ;;  %v233_v19 = vld [vmem:[%s1218_s1 + $0x40] sm:$0xff] }
  0x10   :  { %609 = vmatprep.subr.msk.mxu0 %vm31_vm0, %v850_v11  ;;  %661 = vmatprep.subr.msk.mxu1 %vm31_vm0, %v850_v11  ;;  %v234_v18 = vld [vmem:[%s1218_s1 + $0x48] sm:$0xff]  ;;  %v236_v20 = vld [vmem:[%s1218_s1 + $0x58] sm:$0xff]  ;;  %v235_v21 = vld [vmem:[%s1218_s1 + $0x50] sm:$0xff] }
  0x11   :  { %269 = vperm.xlu1 %694, %v230_v12   ;;  %264 = vperm.xlu0 %693, %v229_v13   ;;  %v921_v22 = vld [vmem:[%s1217_s0 + $0x38] sm:$0xff]  ;;  %v238_v23 = vld [vmem:[%s1218_s1 + $0x68] sm:$0xff]  ;;  %v237_v24 = vld [vmem:[%s1218_s1 + $0x60] sm:$0xff] }
  0x12   :  { %v21_v25 = vld [vmem:[%s1217_s0 + $0x30] sm:$0xff]  ;;  %v240_v26 = vld [vmem:[%s1218_s1 + $0x78] sm:$0xff]  ;;  %v20_v28 = vld [vmem:[%s1217_s0 + $0x28] sm:$0xff] }
  0x13   :  { %610 = vmatpush3.xpose.msk.msra.mxu0 %vm31_vm0, %v850_v11  ;;  %677 = vmatpush3.xpose.msk.msra.mxu1 %vm31_vm0, %v850_v11  ;;  %v239_v27 = vld [vmem:[%s1218_s1 + $0x70] sm:$0xff]  ;;  %v19_v29 = vld [vmem:[%s1217_s0 + $0x20] sm:$0xff]  ;;  %v18_v30 = vld [vmem:[%s1217_s0 + $0x18] sm:$0xff] }
  0x14   :  { %611 = vmatprep.subr.msk.mxu0 %vm31_vm0, %v869_v14  ;;  %662 = vmatprep.subr.msk.mxu1 %vm31_vm0, %v869_v14  ;;  %v17_v31 = vld [vmem:[%s1217_s0 + $0x10] sm:$0xff]  ;;  %v16_v32 = vld [vmem:[%s1217_s0 + $0x8] sm:$0xff]  ;;  %v1022_v43 = vld [vmem:[%s1219_s2] ss:$0 sm:$0xff]  ;;  %s750_s2 = smov [#allocation2]  }
  0x15   :  { %279 = vperm.xlu1 %694, %v232_v15   ;;  %274 = vperm.xlu0 %693, %v231_v16   ;;  %s525_s22 = sshll.u32 %s750_s2, 4  ;;  %s526_s22 = int_to_ptr.vmem [resolvable:$true] %s525_s22 }
  0x16   :  { %s727_s23 = scalar_lea.vmem %s526_s22, 2048  ;;  %p732_p1 = scmp.lt.s32.totalorder %s526_s22, %s526_s22 }
  0x17   :  { %612 = vmatpush3.xpose.msk.msra.mxu0 %vm31_vm0, %v869_v14  ;;  %678 = vmatpush3.xpose.msk.msra.mxu1 %vm31_vm0, %v869_v14  ;;  %p728_p0 = scmp.ne.s32.totalorder %s526_s22, %s727_s23  ;;  %p733_p2 = scmp.lt.s32.totalorder %s727_s23, %s727_s23 }
  0x18   :  { %613 = vmatprep.subr.msk.mxu0 %vm31_vm0, %v888_v17  ;;  %663 = vmatprep.subr.msk.mxu1 %vm31_vm0, %v888_v17 }
  0x19   :  { %289 = vperm.xlu1 %694, %v234_v18   ;;  %284 = vperm.xlu0 %693, %v233_v19   ;;  %p734_p3 = por %p733_p2, %p732_p1 }
  0x1b   :  { %614 = vmatpush3.xpose.msk.msra.mxu0 %vm31_vm0, %v888_v17  ;;  %679 = vmatpush3.xpose.msk.msra.mxu1 %vm31_vm0, %v888_v17  ;;  %p735_p4 = pnand %p734_p3, %p728_p0 }
  0x1c   :  { %615 = vmatprep.subr.msk.mxu0 %vm31_vm0, %v798_v2  ;;  %664 = vmatprep.subr.msk.mxu1 %vm31_vm0, %v798_v2 }
  0x1d   :  { %299 = vperm.xlu1 %694, %v236_v20   ;;  %294 = vperm.xlu0 %693, %v235_v21  }
  0x1f   :  { %616 = vmatpush3.xpose.msk.msra.mxu0 %vm31_vm0, %v798_v2  ;;  %680 = vmatpush3.xpose.msk.msra.mxu1 %vm31_vm0, %v798_v2 }
  0x20   :  { %617 = vmatprep.subr.msk.mxu0 %vm31_vm0, %v921_v22  ;;  %665 = vmatprep.subr.msk.mxu1 %vm31_vm0, %v921_v22 }
  0x21   :  { %309 = vperm.xlu1 %694, %v238_v23   ;;  %304 = vperm.xlu0 %693, %v237_v24  }
  0x23   :  { %618 = vmatpush3.xpose.msk.msra.mxu0 %vm31_vm0, %v921_v22  ;;  %681 = vmatpush3.xpose.msk.msra.mxu1 %vm31_vm0, %v921_v22 }
  0x24   :  { %619 = vmatprep.subr.msk.mxu0 %vm31_vm0, %v21_v25  ;;  %666 = vmatprep.subr.msk.mxu1 %vm31_vm0, %v21_v25 }
  0x25   :  { %319 = vperm.xlu1 %694, %v240_v26   ;;  %314 = vperm.xlu0 %693, %v239_v27  }
  0x27   :  { %620 = vmatpush3.xpose.msk.msra.mxu0 %vm31_vm0, %v21_v25  ;;  %682 = vmatpush3.xpose.msk.msra.mxu1 %vm31_vm0, %v21_v25 }
  0x28   :  { %621 = vmatprep.subr.msk.mxu0 %vm31_vm0, %v20_v28  ;;  %667 = vmatprep.subr.msk.mxu1 %vm31_vm0, %v20_v28 }
  0x2b   :  { %622 = vmatpush3.xpose.msk.msra.mxu0 %vm31_vm0, %v20_v28  ;;  %683 = vmatpush3.xpose.msk.msra.mxu1 %vm31_vm0, %v20_v28 }
  0x2c   :  { %623 = vmatprep.subr.msk.mxu0 %vm31_vm0, %v19_v29  ;;  %668 = vmatprep.subr.msk.mxu1 %vm31_vm0, %v19_v29 }
  0x2f   :  { %624 = vmatpush3.xpose.msk.msra.mxu0 %vm31_vm0, %v19_v29  ;;  %684 = vmatpush3.xpose.msk.msra.mxu1 %vm31_vm0, %v19_v29 }
  0x30   :  { %625 = vmatprep.subr.msk.mxu0 %vm31_vm0, %v18_v30  ;;  %669 = vmatprep.subr.msk.mxu1 %vm31_vm0, %v18_v30 }
  0x33   :  { %626 = vmatpush3.xpose.msk.msra.mxu0 %vm31_vm0, %v18_v30  ;;  %685 = vmatpush3.xpose.msk.msra.mxu1 %vm31_vm0, %v18_v30 }
  0x34   :  { %627 = vmatprep.subr.msk.mxu0 %vm31_vm0, %v17_v31  ;;  %670 = vmatprep.subr.msk.mxu1 %vm31_vm0, %v17_v31 }
  0x37   :  { %628 = vmatpush3.xpose.msk.msra.mxu0 %vm31_vm0, %v17_v31  ;;  %686 = vmatpush3.xpose.msk.msra.mxu1 %vm31_vm0, %v17_v31 }
  0x38   :  { %629 = vmatprep.subr.msk.mxu0 %vm31_vm0, %v16_v32  ;;  %671 = vmatprep.subr.msk.mxu1 %vm31_vm0, %v16_v32 }
  0x3b   :  { %630 = vmatpush3.xpose.msk.msra.mxu0 %vm31_vm0, %v16_v32  ;;  %687 = vmatpush3.xpose.msk.msra.mxu1 %vm31_vm0, %v16_v32 }
  0x3c   :  { %631 = vmatprep.subr.msk.mxu0 %vm31_vm0, %v824_v7  ;;  %672 = vmatprep.subr.msk.mxu1 %vm31_vm0, %v824_v7 }
  0x3f   :  { %632 = vmatpush3.xpose.msk.msra.mxu0 %vm31_vm0, %v824_v7  ;;  %688 = vmatpush3.xpose.msk.msra.mxu1 %vm31_vm0, %v824_v7 }
  0x42   :  { %634 = vmatmul.mubr.msk.f32.vlgmr.msra.gmra.mxu0 %vm31_vm0, %v16_v32  ;;  %646 = vmatmul.mubr.msk.f32.vlgmr.msra.gmra.mxu1 %vm31_vm0, %v888_v17 }
  0x43   :  { %636 = vmatprep.mubr.msk.f32.mxu0 %vm31_vm0, %v17_v31  ;;  %648 = vmatprep.mubr.msk.f32.mxu1 %vm31_vm0, %v869_v14 }
  0x46   :  { %637 = vmatmul.mubr.msk.f32.gmra.mxu0 %vm31_vm0, %v18_v30  ;;  %649 = vmatmul.mubr.msk.f32.gmra.mxu1 %vm31_vm0, %v850_v11 }
  0x47   :  { %639 = vmatprep.mubr.msk.f32.mxu0 %vm31_vm0, %v19_v29  ;;  %651 = vmatprep.mubr.msk.f32.mxu1 %vm31_vm0, %v829_v8 }
  0x4a   :  { %640 = vmatmul.mubr.msk.f32.gmra.mxu0 %vm31_vm0, %v20_v28  ;;  %652 = vmatmul.mubr.msk.f32.gmra.mxu1 %vm31_vm0, %v803_v3 }
  0x4b   :  { %642 = vmatprep.mubr.msk.f32.mxu0 %vm31_vm0, %v21_v25  ;;  %654 = vmatprep.mubr.msk.f32.mxu1 %vm31_vm0, %v781_v1 }
  0x4e   :  { %643 = vmatmul.mubr.msk.f32.gmra.mxu0 %vm31_vm0, %v921_v22  ;;  %655 = vmatmul.mubr.msk.f32.gmra.mxu1 %vm31_vm0, %v776_v0 }
  0x81   :  { %v255_v33 = vpop.permute.xlu1 %254  ;;  %v245_v34 = vpop.permute.xlu0 %244 }
  0x82   :  { %v328_v52 = vadd.f32 %v1022_v43, %v245_v34  ;;  %v330_v20 = vadd.f32 %v1022_v43, %v255_v33 }
  0x88   :  { %v260_v35 = vpop.permute.xlu1 %259  ;;  %v250_v36 = vpop.permute.xlu0 %249 }
  0x89   :  { %v329_v47 = vadd.f32 %v1022_v43, %v250_v36  ;;  %v331_v7 = vadd.f32 %v1022_v43, %v260_v35 }
  0x8c   :  { %v270_v37 = vpop.permute.xlu1 %269  ;;  %v265_v38 = vpop.permute.xlu0 %264 }
  0x8d   :  { %v333_v22 = vadd.f32 %v1022_v43, %v270_v37  ;;  %v332_v23 = vadd.f32 %v1022_v43, %v265_v38 }
  0x90   :  { %v280_v39 = vpop.permute.xlu1 %279  ;;  %v275_v40 = vpop.permute.xlu0 %274 }
  0x91   :  { %v1052_v32 = vadd.f32 %v1022_v43, %v280_v39  ;;  %v1055_v33 = vadd.f32 %v1022_v43, %v275_v40 }
  0x94   :  { %v290_v41 = vpop.permute.xlu1 %289  ;;  %v285_v42 = vpop.permute.xlu0 %284 }
  0x95   :  { %v337_v48 = vadd.f32 %v1022_v43, %v290_v41  ;;  %v336_v53 = vadd.f32 %v1022_v43, %v285_v42 }
  0x98   :  { %v300_v44 = vpop.permute.xlu1 %299  ;;  %v295_v49 = vpop.permute.xlu0 %294 }
  0x99   :  { %v339_v8 = vadd.f32 %v1022_v43, %v300_v44  ;;  %v338_v21 = vadd.f32 %v1022_v43, %v295_v49 }
  0x9c   :  { %v310_v62 = vpop.permute.xlu1 %309  ;;  %v305_v9 = vpop.permute.xlu0 %304 }
  0x9d   :  { %v341_v24 = vadd.f32 %v1022_v43, %v310_v62  ;;  %v340_v37 = vadd.f32 %v1022_v43, %v305_v9 }
  0xa0   :  { %v320_v25 = vpop.permute.xlu1 %319  ;;  %v315_v34 = vpop.permute.xlu0 %314 }
  0xa1   :  { %v1059_v38 = vadd.f32 %v1022_v43, %v320_v25  ;;  %v1066_v40 = vadd.f32 %v1022_v43, %v315_v34 }
 0x102   :  { %v635_v45 = vpop.f32.mrf.mxu0  ;;  %v647_v46 = vpop.f32.mrf.mxu1 }
 0x103   :  { %v345_v50 = vmul.f32 2.0, %v635_v45  ;;  %v353_v51 = vmul.f32 2.0, %v647_v46 }
 0x104   :  { %v146_v54 = vpop.f32.mrf.mxu0  ;;  %v186_v55 = vpop.f32.mrf.mxu1 }
 0x105   :  { %v361_v56 = vsub.f32 %v329_v47, %v345_v50  ;;  %v369_v57 = vsub.f32 %v337_v48, %v353_v51  ;;  %v344_v58 = vmul.f32 2.0, %v146_v54  ;;  %v352_v59 = vmul.f32 2.0, %v186_v55 }
 0x106   :  { %v638_v60 = vpop.f32.mrf.mxu0  ;;  %v650_v61 = vpop.f32.mrf.mxu1 }
 0x107   :  { %v1028_v63 = vmax.f32 %v361_v56, 1e-16  ;;  %v1030_v0 = vmax.f32 %v369_v57, 1e-16  ;;  %v360_v1 = vsub.f32 %v328_v52, %v344_v58  ;;  %v368_v2 = vsub.f32 %v336_v53, %v352_v59 }
 0x108   :  { %v347_v3 = vmul.f32 2.0, %v638_v60  ;;  %v355_v4 = vmul.f32 2.0, %v650_v61  ;;  %v156_v5 = vpop.f32.mrf.mxu0  ;;  %v196_v6 = vpop.f32.mrf.mxu1 }
 0x109   :  { %695 = vrsqrt.f32 %v1028_v63  ;;  %v1036_v12 = vmax.f32 %v360_v1, 1e-16  ;;  %v1038_v13 = vmax.f32 %v368_v2, 1e-16  ;;  %v346_v16 = vmul.f32 2.0, %v156_v5 }
 0x10a   :  { %697 = vrsqrt.f32 %v1030_v0  ;;  %v641_v10 = vpop.f32.mrf.mxu0  ;;  %v653_v11 = vpop.f32.mrf.mxu1  ;;  %v363_v14 = vsub.f32 %v331_v7, %v347_v3  ;;  %v371_v15 = vsub.f32 %v339_v8, %v355_v4  ;;  %v354_v17 = vmul.f32 2.0, %v196_v6 }
 0x10b   :  { %v349_v18 = vmul.f32 2.0, %v641_v10  ;;  %v357_v19 = vmul.f32 2.0, %v653_v11  ;;  %699 = vrsqrt.f32 %v1036_v12  ;;  %v362_v29 = vsub.f32 %v330_v20, %v346_v16 }
 0x10c   :  { %701 = vrsqrt.f32 %v1038_v13  ;;  %v166_v26 = vpop.f32.mrf.mxu0  ;;  %v1047_v27 = vmax.f32 %v363_v14, 1e-16  ;;  %v1049_v28 = vmax.f32 %v371_v15, 1e-16  ;;  %v370_v30 = vsub.f32 %v338_v21, %v354_v17  ;;  %v206_v31 = vpop.f32.mrf.mxu1 }
 0x10d   :  { %v365_v35 = vsub.f32 %v333_v22, %v349_v18  ;;  %v373_v36 = vsub.f32 %v341_v24, %v357_v19  ;;  %v348_v41 = vmul.f32 2.0, %v166_v26  ;;  %vm401_vm1 = vcmp.eq.f32.partialorder %v1028_v63, inf }
 0x10e   :  { %703 = vrsqrt.f32 %v1047_v27  ;;  %vm403_vm2 = vcmp.eq.f32.partialorder %v1028_v63, 0.0  ;;  %v356_v39 = vmul.f32 2.0, %v206_v31  ;;  %v1068_v42 = vmax.f32 %v362_v29, 1e-16  ;;  %v644_v46 = vpop.f32.mrf.mxu0  ;;  %v656_v53 = vpop.f32.mrf.mxu1 }
 0x10f   :  { %705 = vrsqrt.f32 %v1049_v28  ;;  %v1070_v44 = vmax.f32 %v370_v30, 1e-16  ;;  %v1072_v45 = vmax.f32 %v365_v35, 1e-16  ;;  %v404_v47 = vand.u32 2147483648, %v1028_v63 }
 0x110   :  { %vm457_vm3 = vcmp.eq.f32.partialorder %v1030_v0, inf  ;;  %vm459_vm4 = vcmp.eq.f32.partialorder %v1030_v0, 0.0  ;;  %v1077_v48 = vmax.f32 %v373_v36, 1e-16  ;;  %v460_v49 = vand.u32 2147483648, %v1030_v0  ;;  %v176_v9 = vpop.f32.mrf.mxu0  ;;  %v216_v10 = vpop.f32.mrf.mxu1 }
 0x111   :  { %vm394_vm5 = vcmp.eq.f32.partialorder %v1036_v12, inf  ;;  %707 = vrsqrt.f32 %v1068_v42  ;;  %v364_v43 = vsub.f32 %v332_v23, %v348_v41  ;;  %vm396_vm6 = vcmp.eq.f32.partialorder %v1036_v12, 0.0 }
 0x112   :  { %709 = vrsqrt.f32 %v1070_v44  ;;  %v372_v51 = vsub.f32 %v340_v37, %v356_v39  ;;  %v351_v52 = vmul.f32 2.0, %v644_v46  ;;  %v397_v56 = vand.u32 2147483648, %v1036_v12 }
 0x113   :  { %vm450_vm7 = vcmp.eq.f32.partialorder %v1038_v13, inf  ;;  %711 = vrsqrt.f32 %v1072_v45  ;;  %vm452_vm8 = vcmp.eq.f32.partialorder %v1038_v13, 0.0  ;;  %v453_v58 = vand.u32 2147483648, %v1038_v13 }
 0x114   :  { %713 = vrsqrt.f32 %v1077_v48  ;;  %vm415_vm9 = vcmp.eq.f32.partialorder %v1047_v27, inf  ;;  %v1096_v60 = vmax.f32 %v364_v43, 1e-16  ;;  %v359_v61 = vmul.f32 2.0, %v656_v53 }
 0x115   :  { %v1103_v3 = vmax.f32 %v372_v51, 1e-16  ;;  %v367_v4 = vsub.f32 %v1052_v32, %v351_v52  ;;  %vm417_vm10 = vcmp.eq.f32.partialorder %v1047_v27, 0.0  ;;  %v418_v8 = vand.u32 2147483648, %v1047_v27 }
 0x116   :  { %v696_v50 = vpop.eup %695  ;;  %715 = vrsqrt.f32 %v1096_v60  ;;  %vm471_vm11 = vcmp.eq.f32.partialorder %v1049_v28, inf  ;;  %vm473_vm12 = vcmp.eq.f32.partialorder %v1049_v28, 0.0  ;;  %v474_v11 = vand.u32 2147483648, %v1049_v28 }
 0x117   :  { %v698_v54 = vpop.eup %697  ;;  %v400_v55 = vmul.f32 %v696_v50, %v1028_v63  ;;  %717 = vrsqrt.f32 %v1103_v3  ;;  %vm408_vm13 = vcmp.eq.f32.partialorder %v1068_v42, inf  ;;  %v1126_v17 = vmax.f32 %v367_v4, 1e-16 }
 0x118   :  { %v456_v57 = vmul.f32 %v698_v54, %v1030_v0  ;;  %v700_v62 = vpop.eup %699  ;;  %v375_v18 = vsub.f32 %v1059_v38, %v359_v61  ;;  %v350_v22 = vmul.f32 2.0, %v176_v9  ;;  %v358_v23 = vmul.f32 2.0, %v216_v10 }
 0x119   :  { %v402_v59 = vsel %vm401_vm1, %v1028_v63, %v400_v55  ;;  %v702_v5 = vpop.eup %701  ;;  %v393_v7 = vmul.f32 %v700_v62, %v1036_v12  ;;  %vm410_vm14 = vcmp.eq.f32.partialorder %v1068_v42, 0.0  ;;  %v411_v24 = vand.u32 2147483648, %v1068_v42 }
 0x11a   :  { %v405_v1 = vsel %vm403_vm2, %v404_v47, %v402_v59  ;;  %v458_v2 = vsel %vm457_vm3, %v1030_v0, %v456_v57  ;;  %v449_v63 = vmul.f32 %v702_v5, %v1038_v13  ;;  %719 = vrsqrt.f32 %v1126_v17 }
 0x11b   :  { %505 = vst [vmem:[#allocation2 + $0x8] sm:$0xff] %v405_v1  ;;  %v461_v6 = vsel %vm459_vm4, %v460_v49, %v458_v2  ;;  %v395_v0 = vsel %vm394_vm5, %v1036_v12, %v393_v7  ;;  %v704_v14 = vpop.eup %703  ;;  %vm464_vm15 = vcmp.eq.f32.partialorder %v1070_v44, inf  ;;  %v366_v26 = vsub.f32 %v1055_v33, %v350_v22 }
 0x11c   :  { %513 = vst [vmem:[#allocation2 + $0x48] sm:$0xff] %v461_v6  ;;  %v398_v15 = vsel %vm396_vm6, %v397_v56, %v395_v0  ;;  %v451_v16 = vsel %vm450_vm7, %v1038_v13, %v449_v63  ;;  %v706_v19 = vpop.eup %705  ;;  %v414_v21 = vmul.f32 %v704_v14, %v1047_v27  ;;  %v1140_v13 = vmax.f32 %v375_v18, 1e-16 }
 0x11d   :  { %504 = vst [vmem:[#allocation2] sm:$0xff] %v398_v15  ;;  %v454_v20 = vsel %vm452_vm8, %v453_v58, %v451_v16  ;;  %v470_v12 = vmul.f32 %v706_v19, %v1049_v28  ;;  %vm466_vm0 = vcmp.eq.f32.partialorder %v1070_v44, 0.0  ;;  %v374_v32 = vsub.f32 %v1066_v40, %v358_v23 }
 0x11e   :  { %512 = vst [vmem:[#allocation2 + $0x40] sm:$0xff] %v454_v20  ;;  %v416_v25 = vsel %vm415_vm9, %v1047_v27, %v414_v21  ;;  %v708_v29 = vpop.eup %707  ;;  %v467_v33 = vand.u32 2147483648, %v1070_v44  ;;  %721 = vrsqrt.f32 %v1140_v13  ;;  %vm429_vm1 = vcmp.eq.f32.partialorder %v1072_v45, inf }
 0x11f   :  { %v419_v30 = vsel %vm417_vm10, %v418_v8, %v416_v25  ;;  %v472_v31 = vsel %vm471_vm11, %v1049_v28, %v470_v12  ;;  %v710_v34 = vpop.eup %709  ;;  %v407_v36 = vmul.f32 %v708_v29, %v1068_v42  ;;  %vm431_vm2 = vcmp.eq.f32.partialorder %v1072_v45, 0.0 }
 0x120   :  { %507 = vst [vmem:[#allocation2 + $0x18] sm:$0xff] %v419_v30  ;;  %v475_v35 = vsel %vm473_vm12, %v474_v11, %v472_v31  ;;  %v712_v27 = vpop.eup %711  ;;  %v463_v37 = vmul.f32 %v710_v34, %v1070_v44  ;;  %v1158_v38 = vmax.f32 %v366_v26, 1e-16  ;;  %v432_v40 = vand.u32 2147483648, %v1072_v45 }
 0x121   :  { %515 = vst [vmem:[#allocation2 + $0x58] sm:$0xff] %v475_v35  ;;  %v714_v41 = vpop.eup %713  ;;  %v409_v28 = vsel %vm408_vm13, %v1068_v42, %v407_v36  ;;  %v428_v39 = vmul.f32 %v712_v27, %v1072_v45  ;;  %v1165_v46 = vmax.f32 %v374_v32, 1e-16  ;;  %vm485_vm3 = vcmp.eq.f32.partialorder %v1077_v48, inf }
 0x122   :  { %v412_v47 = vsel %vm410_vm14, %v411_v24, %v409_v28  ;;  %v465_v49 = vsel %vm464_vm15, %v1070_v44, %v463_v37  ;;  %v484_v43 = vmul.f32 %v714_v41, %v1077_v48  ;;  %723 = vrsqrt.f32 %v1158_v38 }
 0x123   :  { %506 = vst [vmem:[#allocation2 + $0x10] sm:$0xff] %v412_v47  ;;  %v468_v50 = vsel %vm466_vm0, %v467_v33, %v465_v49  ;;  %v430_v51 = vsel %vm429_vm1, %v1072_v45, %v428_v39  ;;  %v488_v52 = vand.u32 2147483648, %v1077_v48  ;;  %v716_v42 = vpop.eup %715  ;;  %vm487_vm4 = vcmp.eq.f32.partialorder %v1077_v48, 0.0 }
 0x124   :  { %514 = vst [vmem:[#allocation2 + $0x50] sm:$0xff] %v468_v50  ;;  %v433_v53 = vsel %vm431_vm2, %v432_v40, %v430_v51  ;;  %v486_v54 = vsel %vm485_vm3, %v1077_v48, %v484_v43  ;;  %725 = vrsqrt.f32 %v1165_v46  ;;  %v718_v55 = vpop.eup %717  ;;  %v421_v56 = vmul.f32 %v716_v42, %v1096_v60 }
 0x125   :  { %509 = vst [vmem:[#allocation2 + $0x28] sm:$0xff] %v433_v53  ;;  %v489_v44 = vsel %vm487_vm4, %v488_v52, %v486_v54  ;;  %vm422_vm5 = vcmp.eq.f32.partialorder %v1096_v60, inf  ;;  %v425_v57 = vand.u32 2147483648, %v1096_v60  ;;  %v477_v58 = vmul.f32 %v718_v55, %v1103_v3 }
 0x126   :  { %517 = vst [vmem:[#allocation2 + $0x68] sm:$0xff] %v489_v44  ;;  %v423_v45 = vsel %vm422_vm5, %v1096_v60, %v421_v56  ;;  %vm424_vm6 = vcmp.eq.f32.partialorder %v1096_v60, 0.0  ;;  %vm478_vm7 = vcmp.eq.f32.partialorder %v1103_v3, inf  ;;  %v481_v48 = vand.u32 2147483648, %v1103_v3 }
 0x127   :  { %v426_v59 = vsel %vm424_vm6, %v425_v57, %v423_v45  ;;  %v479_v61 = vsel %vm478_vm7, %v1103_v3, %v477_v58  ;;  %vm480_vm8 = vcmp.eq.f32.partialorder %v1103_v3, 0.0  ;;  %v720_v62 = vpop.eup %719  ;;  %vm443_vm9 = vcmp.eq.f32.partialorder %v1126_v17, inf }
 0x128   :  { %508 = vst [vmem:[#allocation2 + $0x20] sm:$0xff] %v426_v59  ;;  %v482_v1 = vsel %vm480_vm8, %v481_v48, %v479_v61  ;;  %v442_v2 = vmul.f32 %v720_v62, %v1126_v17  ;;  %v446_v4 = vand.u32 2147483648, %v1126_v17  ;;  %vm445_vm10 = vcmp.eq.f32.partialorder %v1126_v17, 0.0 }
 0x129   :  { %516 = vst [vmem:[#allocation2 + $0x60] sm:$0xff] %v482_v1  ;;  %vm499_vm11 = vcmp.eq.f32.partialorder %v1140_v13, inf  ;;  %v502_v3 = vand.u32 2147483648, %v1140_v13  ;;  %vm501_vm12 = vcmp.eq.f32.partialorder %v1140_v13, 0.0  ;;  %vm436_vm13 = vcmp.eq.f32.partialorder %v1158_v38, inf }
 0x12a   :  { %v444_v5 = vsel %vm443_vm9, %v1126_v17, %v442_v2  ;;  %v439_v11 = vand.u32 2147483648, %v1158_v38  ;;  %vm438_vm14 = vcmp.eq.f32.partialorder %v1158_v38, 0.0  ;;  %vm492_vm15 = vcmp.eq.f32.partialorder %v1165_v46, inf }
 0x12b   :  { %v722_v60 = vpop.eup %721  ;;  %v447_v6 = vsel %vm445_vm10, %v446_v4, %v444_v5  ;;  %v495_v17 = vand.u32 2147483648, %v1165_v46  ;;  %vm494_vm0 = vcmp.eq.f32.partialorder %v1165_v46, 0.0 }
 0x12c   :  { %v498_v7 = vmul.f32 %v722_v60, %v1140_v13  ;;  %511 = vst [vmem:[#allocation2 + $0x38] sm:$0xff] %v447_v6 }
 0x12e   :  { %v500_v8 = vsel %vm499_vm11, %v1140_v13, %v498_v7 }
 0x12f   :  { %v724_v63 = vpop.eup %723  ;;  %v503_v9 = vsel %vm501_vm12, %v502_v3, %v500_v8 }
 0x130   :  { %v435_v10 = vmul.f32 %v724_v63, %v1158_v38  ;;  %519 = vst [vmem:[#allocation2 + $0x78] sm:$0xff] %v503_v9 }
 0x131   :  { %v726_v0 = vpop.eup %725 }
 0x132   :  { %v437_v14 = vsel %vm436_vm13, %v1158_v38, %v435_v10  ;;  %v491_v15 = vmul.f32 %v726_v0, %v1165_v46 }
 0x133   :  { %v440_v16 = vsel %vm438_vm14, %v439_v11, %v437_v14 }
 0x134   :  { %510 = vst [vmem:[#allocation2 + $0x30] sm:$0xff] %v440_v16  ;;  %v493_v18 = vsel %vm492_vm15, %v1165_v46, %v491_v15 }
 0x135   :  { %v496_v19 = vsel %vm494_vm0, %v495_v17, %v493_v18 }
 0x136   :  { %518 = vst [vmem:[#allocation2 + $0x70] sm:$0xff] %v496_v19 }
 0x137   :  { %738 = shalt.err (!%p735_p4)
}
 0x138   :  { %s751_s24 = smov 128   ;;  %s752_s25 = smov 8  }
 0x139   :  { %531 = dma.vmem_to_hbm [thread:$0]  %s526_s22, 2048, %s1220_s3, [#allocation3], %s751_s24, %s751_s24, %s752_s25  }
 0x13a   :  { %747 = dma.done.wait [#allocation3], 2048  }
 0x13b   :  { %748 = vsyncadd [#allocation3], 4294965248 }
 0x13c   :  { %535 = vsyncpa [#allocation3], 1 }

</bundles_post_ra>
